<compile_context>
chip_gen: v7x
topology: tpu7x:2x2x1
jax: 0.10.0
libtpu: 0.0.40
codegen_flags: <defaults>
</compile_context>

<pallas_src>
import math
import jax
import jax.numpy as jnp
from jax import lax
from jax.experimental import pallas as pl
from jax.experimental.pallas import tpu as pltpu

EPS = 1e-5     # BatchNorm2d default eps
LANE = 128     # TPU lane width


def _round_up(x, m):
    return ((x + m - 1) // m) * m


def _tpu_budgets():
    """(vmem_limit_bytes, max hw-tile width) per TPU generation, safe fallback."""
    try:
        vmem = int(pltpu.get_tpu_info().vmem_capacity_bytes)
    except Exception:
        vmem = 64 * 1024 * 1024
    if vmem >= 96 * 1024 * 1024:          # v5e / v6e: 128 MiB physical VMEM
        return 64 * 1024 * 1024, 2048
    return 32 * 1024 * 1024, 1024          # v7x: 64 MiB physical VMEM


# --------------------------- Pallas kernels ---------------------------------

def _gemm_stats_kernel(w_ref, x_ref, y_ref, stats_ref):
    """One conv-GEMM tile + per-channel sum / sum-of-squares accumulation.

    w_ref:     (coutp, kd)          resident across the whole grid
    x_ref:     (1, kd, tile_hw)     im2col columns for one hw tile
    y_ref:     (1, cout, tile_hw)   pre-BN activations (conv output, no bias)
    stats_ref: (1, cout, 2)         [...,0]=sum(y)  [...,1]=sum(y*y), per image
    """
    @pl.when(pl.program_id(1) == 0)
    def _():
        stats_ref[...] = jnp.zeros_like(stats_ref)

    cout = y_ref.shape[1]
    y = jnp.dot(w_ref[...], x_ref[0], preferred_element_type=jnp.float32)
    y = y[:cout, :]                                    # drop MXU pad channels
    y_ref[0] = y.astype(y_ref.dtype)
    # Separate row accumulations (no concat / whole-block RMW).
    stats_ref[0, :, 0:1] += jnp.sum(y, axis=1, keepdims=True)
    stats_ref[0, :, 1:2] += jnp.sum(y * y, axis=1, keepdims=True)


def _bn_elu_kernel(y_ref, scale_ref, shift_ref, o_ref):
    """Folded BN affine + ELU(alpha=1) over a pre-BN tile (already NCHW-laid)."""
    y = y_ref[0].astype(jnp.float32) * scale_ref[...] + shift_ref[...]
    o_ref[0] = jnp.where(y > 0, y, jnp.expm1(jnp.minimum(y, 0.0))).astype(o_ref.dtype)


# --------------------------- module forward ---------------------------------

def conv_module_forward(x_nchw, weight, bias, gamma, beta, *,
                        kernel_size=3, stride=2, dilation=1, use_bf16=False):
    """Forward of the PyTorch `Conv` module (is_3d_conv=False,
    use_normalization=True, use_relu=False => ELU), training-mode BN."""
    # NOTE: dropping the conv bias is valid ONLY because training-mode
    # BatchNorm follows (bias shifts y and its batch mean equally, var unchanged).
    del bias

    n, cin, h, w = x_nchw.shape
    cout = weight.shape[0]
    k = kernel_size
    p = int(math.floor(dilation * (k - 1) / 2))

    vmem_limit, max_tile_hw = _tpu_budgets()

    x = x_nchw.astype(jnp.float32)
    x = jnp.pad(x, ((0, 0), (0, 0), (p, p), (p, p)))
    hp, wp = h + 2 * p, w + 2 * p
    ho = (hp - (dilation * (k - 1) + 1)) // stride + 1
    wo = (wp - (dilation * (k - 1) + 1)) // stride + 1
    hw = ho * wo
    kd = cin * k * k

    # im2col, tap-major, channels-first: (N, Kd, Ho*Wo).  No NHWC transpose and
    # no Kd lane-padding copy in HBM.
    # TODO(synk): fold this gather into the GEMM kernel (K*K reduction axis over
    # the padded NCHW input) to kill the K*K HBM expansion of this build.
    cols = []
    for kh in range(k):
        for kw in range(k):
            hs, ws = kh * dilation, kw * dilation
            cols.append(x[:, :, hs:hs + stride * (ho - 1) + 1:stride,
                              ws:ws + stride * (wo - 1) + 1:stride]
                        .reshape(n, cin, hw))
    x_mat = jnp.concatenate(cols, axis=1)              # (N, Kd, hw)

    # hw tiling: single full-width tile when it fits VMEM, else 128-multiples
    # (bounds per-image pad waste to < tile_hw).
    if _round_up(hw, 8) <= max_tile_hw:
        tile_hw = hw_pad = _round_up(hw, 8)
    else:
        tile_hw = max_tile_hw
        hw_pad = _round_up(hw, tile_hw)
    if hw_pad != hw:
        x_mat = jnp.pad(x_mat, ((0, 0), (0, 0), (0, hw_pad - hw)))
    num_hw_tiles = hw_pad // tile_hw

    # weight (Cout,Cin,K,K) -> (coutp, Kd), tap-major to match x_mat rows.
    coutp = _round_up(cout, LANE)
    w_mat = jnp.transpose(weight.astype(jnp.float32), (0, 2, 3, 1)).reshape(cout, kd)
    w_mat = jnp.pad(w_mat, ((0, coutp - cout), (0, 0)))

    gemm_dtype = jnp.bfloat16 if use_bf16 else jnp.float32
    y_dtype = jnp.bfloat16 if use_bf16 else jnp.float32
    w_in = w_mat.astype(gemm_dtype)
    x_in = x_mat.astype(gemm_dtype)

    grid = (n, num_hw_tiles)

    # --- pass 1: conv GEMM once; emit pre-BN activations + per-image stats ---
    y_pre, stats = pl.pallas_call(
        _gemm_stats_kernel,
        out_shape=(jax.ShapeDtypeStruct((n, cout, hw_pad), y_dtype),
                   jax.ShapeDtypeStruct((n, cout, 2), jnp.float32)),
        grid=grid,
        in_specs=[
            pl.BlockSpec((coutp, kd), lambda i, j: (0, 0)),        # resident
            pl.BlockSpec((1, kd, tile_hw), lambda i, j: (i, 0, j)),
        ],
        out_specs=(
            pl.BlockSpec((1, cout, tile_hw), lambda i, j: (i, 0, j)),
            pl.BlockSpec((1, cout, 2), lambda i, j: (i, 0, 0)),
        ),
        compiler_params=pltpu.CompilerParams(
            dimension_semantics=("parallel", "arbitrary"),
            vmem_limit_bytes=vmem_limit),
    )(w_in, x_in)

    # Fold BN (training stats, biased variance) into a per-channel affine.
    # NOTE: one-pass var (E[y^2]-E[y]^2) in f32; switch to Welford-style
    # per-tile partials if very large N*Ho*Wo or |mean| >> std is expected.
    count = jnp.float32(n * hw)                        # padded hw columns are 0
    s = jnp.sum(stats, axis=0)                         # (cout, 2)
    mean = s[:, 0] / count
    var = jnp.maximum(s[:, 1] / count - mean * mean, 0.0)
    inv = lax.rsqrt(var + EPS)
    g = gamma.astype(jnp.float32)
    scale = (g * inv).reshape(cout, 1)
    shift = (beta.astype(jnp.float32) - mean * g * inv).reshape(cout, 1)

    # --- pass 2: elementwise folded-BN affine + ELU, output already NCHW -----
    out_flat = pl.pallas_call(
        _bn_elu_kernel,
        out_shape=jax.ShapeDtypeStruct((n, cout, hw_pad), jnp.float32),
        grid=grid,
        in_specs=[
            pl.BlockSpec((1, cout, tile_hw), lambda i, j: (i, 0, j)),
            pl.BlockSpec((cout, 1), lambda i, j: (0, 0)),
            pl.BlockSpec((cout, 1), lambda i, j: (0, 0)),
        ],
        out_specs=pl.BlockSpec((1, cout, tile_hw), lambda i, j: (i, 0, j)),
        compiler_params=pltpu.CompilerParams(
            dimension_semantics=("parallel", "parallel"),
            vmem_limit_bytes=vmem_limit),
    )(y_pre, scale, shift)

    if hw_pad != hw:
        out_flat = out_flat[:, :, :hw]
    return out_flat.reshape(n, cout, ho, wo)           # NCHW; reshape is free


# --------------------------- pure-JAX reference ------------------------------

def reference_forward(x_nchw, weight, bias, gamma, beta, *,
                      kernel_size=3, stride=2, dilation=1):
    """Pure-JAX reference matching the PyTorch module (training-mode BN)."""
    k = kernel_size
    p = int(math.floor(dilation * (k - 1) / 2))
    y = lax.conv_general_dilated(
        x_nchw.astype(jnp.float32), weight.astype(jnp.float32),
        window_strides=(stride, stride),
        padding=((p, p), (p, p)),
        rhs_dilation=(dilation, dilation),
        dimension_numbers=("NCHW", "OIHW", "NCHW"))
    y = y + bias.reshape(1, -1, 1, 1)
    mean = jnp.mean(y, axis=(0, 2, 3), keepdims=True)
    var = jnp.mean(jnp.square(y - mean), axis=(0, 2, 3), keepdims=True)
    y = (y - mean) / jnp.sqrt(var + EPS)
    y = y * gamma.reshape(1, -1, 1, 1) + beta.reshape(1, -1, 1, 1)
    return jnp.where(y > 0, y, jnp.exp(jnp.minimum(y, 0.0)) - 1.0)


if __name__ == "__main__":
    key = jax.random.PRNGKey(0)
    k_x, k_w, k_b = jax.random.split(key, 3)

    # Module config: Conv(num_in_layers=4, num_out_layers=8, kernel_size=3, stride=2)
    N, Cin, H, W = 2, 4, 16, 16
    Cout, K, stride, dilation = 8, 3, 2, 1

    x = jax.random.normal(k_x, (N, Cin, H, W), dtype=jnp.float32)

    fan_in = Cin * K * K
    bound = 1.0 / math.sqrt(fan_in)
    weight = jax.random.uniform(k_w, (Cout, Cin, K, K), jnp.float32, -bound, bound)
    bias = jax.random.uniform(k_b, (Cout,), jnp.float32, -bound, bound)
    gamma = jnp.ones((Cout,), jnp.float32)   # BatchNorm default affine init
    beta = jnp.zeros((Cout,), jnp.float32)

    out = conv_module_forward(x, weight, bias, gamma, beta,
                              kernel_size=K, stride=stride, dilation=dilation)
    out = jax.block_until_ready(out)

    ref = reference_forward(x, weight, bias, gamma, beta,
                            kernel_size=K, stride=stride, dilation=dilation)
    assert out.shape == ref.shape == (N, Cout, H // 2, W // 2)
    err = float(jnp.max(jnp.abs(out - ref)))
    assert err < 1e-4, f"max abs err {err}"

    print("KERNEL_OK")
</pallas_src>

<mosaic_0001>
module attributes {stable_mosaic.version = 11 : i64} {
  func.func @_gemm_stats_kernel(%arg0: i32, %arg1: i32, %arg2: memref<128x36xf32, #tpu.memory_space<vmem>>, %arg3: memref<1x36x64xf32, #tpu.memory_space<vmem>>, %arg4: memref<1x8x64xf32, #tpu.memory_space<vmem>>, %arg5: memref<1x8x2xf32, #tpu.memory_space<vmem>>) attributes {dimension_semantics = [#tpu.dimension_semantics<parallel>, #tpu.dimension_semantics<arbitrary>], iteration_bounds = array<i64: 2, 1>, scalar_prefetch = 0 : i64, scratch_operands = 0 : i64, tpu.core_type = #tpu.core_type<tc>, window_params = [{pipeline_mode = #tpu.pipeline_mode<synchronous>, transform_indices = @transform_0, window_bounds = array<i64: 128, 36>}, {transform_indices = @transform_1, window_bounds = array<i64: 1, 36, 64>}, {transform_indices = @transform_2, window_bounds = array<i64: 1, 8, 64>}, {transform_indices = @transform_3, window_bounds = array<i64: 1, 8, 2>}]} {
    %c0_i32 = arith.constant 0 : i32
    %0 = arith.cmpi eq, %arg1, %c0_i32 : i32
    %1 = arith.extui %0 : i1 to i32
    %c0_i32_0 = arith.constant 0 : i32
    %2 = arith.cmpi ne, %1, %c0_i32_0 : i32
    scf.if %2 {
      %cst_21 = arith.constant 0.000000e+00 : f32
      %28 = vector.broadcast %cst_21 : f32 to vector<1x8x2xf32>
      %c0_22 = arith.constant 0 : index
      %c0_23 = arith.constant 0 : index
      %c0_24 = arith.constant 0 : index
      %29 = vector.load %arg5[%c0_22, %c0_23, %c0_24] : memref<1x8x2xf32, #tpu.memory_space<vmem>>, vector<1x8x2xf32>
      tpu.vector_store %arg5[%c0_22, %c0_23, %c0_24], %28 {strides = array<i32>} : memref<1x8x2xf32, #tpu.memory_space<vmem>>, vector<1x8x2xf32>,
    } else {
    }
    %c0 = arith.constant 0 : index
    %c0_1 = arith.constant 0 : index
    %3 = vector.load %arg2[%c0, %c0_1] : memref<128x36xf32, #tpu.memory_space<vmem>>, vector<128x36xf32>
    %c0_2 = arith.constant 0 : index
    %c0_3 = arith.constant 0 : index
    %c0_4 = arith.constant 0 : index
    %4 = vector.load %arg3[%c0_2, %c0_3, %c0_4] : memref<1x36x64xf32, #tpu.memory_space<vmem>>, vector<1x36x64xf32>
    %5 = vector.shape_cast %4 : vector<1x36x64xf32> to vector<36x64xf32>
    %cst = arith.constant dense<0.000000e+00> : vector<128x64xf32>
    %6 = tpu.matmul %3, %5, %cst {dimension_numbers = #tpu.dot_dimension_numbers<[1], [0], [0], [1], [0, 0, 1, 1], [], []>} : vector<128x36xf32>, vector<36x64xf32>, vector<128x64xf32> -> vector<128x64xf32>
    %7 = vector.extract_strided_slice %6 {offsets = [0, 0], sizes = [8, 64], strides = [1, 1]} : vector<128x64xf32> to vector<8x64xf32>
    %c0_5 = arith.constant 0 : index
    %c0_6 = arith.constant 0 : index
    %c0_7 = arith.constant 0 : index
    %8 = vector.load %arg4[%c0_5, %c0_6, %c0_7] : memref<1x8x64xf32, #tpu.memory_space<vmem>>, vector<1x8x64xf32>
    %9 = vector.shape_cast %8 : vector<1x8x64xf32> to vector<8x64xf32>
    %10 = vector.shape_cast %7 : vector<8x64xf32> to vector<1x8x64xf32>
    tpu.vector_store %arg4[%c0_5, %c0_6, %c0_7], %10 {strides = array<i32>} : memref<1x8x64xf32, #tpu.memory_space<vmem>>, vector<1x8x64xf32>,
    %c0_8 = arith.constant 0 : index
    %c0_9 = arith.constant 0 : index
    %c0_10 = arith.constant 0 : index
    %11 = vector.load %arg5[%c0_8, %c0_9, %c0_10] : memref<1x8x2xf32, #tpu.memory_space<vmem>>, vector<1x8x1xf32>
    %12 = vector.shape_cast %11 : vector<1x8x1xf32> to vector<8x1xf32>
    %cst_11 = arith.constant dense<0.000000e+00> : vector<8xf32>
    %13 = vector.multi_reduction <add>, %7, %cst_11 [1] : vector<8x64xf32> to vector<8xf32>
    %14 = vector.shape_cast %13 : vector<8xf32> to vector<8x1xf32>
    %15 = arith.addf %12, %14 : vector<8x1xf32>
    %c0_12 = arith.constant 0 : index
    %c0_13 = arith.constant 0 : index
    %c0_14 = arith.constant 0 : index
    %16 = vector.load %arg5[%c0_12, %c0_13, %c0_14] : memref<1x8x2xf32, #tpu.memory_space<vmem>>, vector<1x8x1xf32>
    %17 = vector.shape_cast %16 : vector<1x8x1xf32> to vector<8x1xf32>
    %18 = vector.shape_cast %15 : vector<8x1xf32> to vector<1x8x1xf32>
    tpu.vector_store %arg5[%c0_12, %c0_13, %c0_14], %18 {strides = array<i32>} : memref<1x8x2xf32, #tpu.memory_space<vmem>>, vector<1x8x1xf32>,
    %c0_15 = arith.constant 0 : index
    %c0_16 = arith.constant 0 : index
    %c1 = arith.constant 1 : index
    %19 = vector.load %arg5[%c0_15, %c0_16, %c1] : memref<1x8x2xf32, #tpu.memory_space<vmem>>, vector<1x8x1xf32>
    %20 = vector.shape_cast %19 : vector<1x8x1xf32> to vector<8x1xf32>
    %21 = arith.mulf %7, %7 : vector<8x64xf32>
    %cst_17 = arith.constant dense<0.000000e+00> : vector<8xf32>
    %22 = vector.multi_reduction <add>, %21, %cst_17 [1] : vector<8x64xf32> to vector<8xf32>
    %23 = vector.shape_cast %22 : vector<8xf32> to vector<8x1xf32>
    %24 = arith.addf %20, %23 : vector<8x1xf32>
    %c0_18 = arith.constant 0 : index
    %c0_19 = arith.constant 0 : index
    %c1_20 = arith.constant 1 : index
    %25 = vector.load %arg5[%c0_18, %c0_19, %c1_20] : memref<1x8x2xf32, #tpu.memory_space<vmem>>, vector<1x8x1xf32>
    %26 = vector.shape_cast %25 : vector<1x8x1xf32> to vector<8x1xf32>
    %27 = vector.shape_cast %24 : vector<8x1xf32> to vector<1x8x1xf32>
    tpu.vector_store %arg5[%c0_18, %c0_19, %c1_20], %27 {strides = array<i32>} : memref<1x8x2xf32, #tpu.memory_space<vmem>>, vector<1x8x1xf32>,
    return
  }
  func.func @transform_0(%arg0: i32, %arg1: i32) -> (i32, i32) {
    %c0_i32 = arith.constant 0 : i32
    %c0_i32_0 = arith.constant 0 : i32
    %c0_i32_1 = arith.constant 0 : i32
    return %c0_i32, %c0_i32_0 : i32, i32
  }
  func.func @transform_1(%arg0: i32, %arg1: i32) -> (i32, i32, i32) {
    %c0_i32 = arith.constant 0 : i32
    %c0_i32_0 = arith.constant 0 : i32
    return %arg0, %c0_i32, %arg1 : i32, i32, i32
  }
  func.func @transform_2(%arg0: i32, %arg1: i32) -> (i32, i32, i32) {
    %c0_i32 = arith.constant 0 : i32
    %c0_i32_0 = arith.constant 0 : i32
    return %arg0, %c0_i32, %arg1 : i32, i32, i32
  }
  func.func @transform_3(%arg0: i32, %arg1: i32) -> (i32, i32, i32) {
    %c0_i32 = arith.constant 0 : i32
    %c0_i32_0 = arith.constant 0 : i32
    %c0_i32_1 = arith.constant 0 : i32
    return %arg0, %c0_i32, %c0_i32_0 : i32, i32, i32
  }
}

</mosaic_0001>

<bundles_post_ra>
// kernel: tpu_custom_call.1
= control target key start
LH: loop header
LB: loop body
LE: loop exit
PB: predicated region body
PF: predicated region fallthrough
CT: control target
= control target key end

     0   :  { %9 = vsyncpa [#allocation3], 0  ;;  %s997_s0 = inlined_call_operand.vmem [shape: f32[128,36], index: 0, kind: input, shape index: {}]   ;;  %s998_s1 = inlined_call_operand.vmem [shape: f32[2,36,64], index: 1, kind: input, shape index: {}]   ;;  %s999_s2 = inlined_call_operand.hbm [shape: f32[2,8,64], index: 2, kind: output, shape index: {0}]   ;;  %s1000_s3 = inlined_call_operand.vmem [shape: f32[2,8,2], index: 3, kind: output, shape index: {1}]  }
   0x1   :  { %11 = vsyncpa [#allocation3 + $0x1], 0  ;;  %s809_s12 = smov 0   ;;  %s811_s13 = smov 0  }
   0x2   :  { %s813_s14 = smov 0   ;;  %s815_s15 = smov 0  }
   0x3   :  { %s817_s16 = smov 0   ;;  %s819_s17 = smov 0  }
   0x4 LB: > { %s552_s18 = sadd.s32 4294967295, %s785_s17   ;;  %s553_s19 = sadd.s32 4294967294, %s785_s17   ;;  %s785_s17 = sphi %s819_s17, %s17_s17   ;;  %s781_s16 = sphi %s817_s16, %s1007_s16   ;;  %s777_s15 = sphi %s815_s15, %s1006_s15   ;;  %s773_s14 = sphi %s813_s14, %s1005_s14   ;;  %s769_s13 = sphi %s811_s13, %s1004_s13   ;;  %s765_s12 = sphi %s809_s12, %s1003_s12  }
   0x5   : > { %s29_s20 = sadd.s32 1, %s781_s16  ;;  %s87_s21 = sadd.s32 1, %s773_s14 }
   0x6   : > { %p31_p0 = scmp.ge.s32.totalorder %s29_s20, 2  ;;  %p97_p1 = scmp.ne.s32.totalorder %s773_s14, %s769_s13 }
   0x7   : > { %p98_p2 = scmp.eq.s32.totalorder %s552_s18, 1  ;;  %p103_p3 = scmp.ne.s32.totalorder %s769_s13, %s765_s12 }
   0x8   : > { %s1009_s20 = smov (%p31_p0, %s29_s20), 0  ;;  %p104_p5 = scmp.eq.s32.totalorder %s553_s19, 1 }
   0x9   : > { %p849_p4 = por %p98_p2, %p97_p1  ;;  %s82_s23 = ssub.s32 %s781_s16, %s1009_s20 }
   0xa   : > { %p556_p6 = scmp.ge.s32.totalorder %s785_s17, 1  ;;  %p85_p7 = scmp.eq.s32.totalorder %s82_s23, 0 }
   0xb   : > { %p856_p8 = por %p104_p5, %p103_p3  ;;  %p162_p9 = scmp.lt.s32.totalorder %s785_s17, 3 }
   0xc   : > { %s862_s25 = scalar_select %p85_p7, %s773_s14, %s87_s21  }
   0xd   : > { %p163_p10 = pnand %p556_p6, %p162_p9 }
   0xe   : > { %p193_p11 = scmp.lt.s32.totalorder (!%p163_p10), %s777_s15, 1  ;;  %v211_v0 = vld [vmem:[%s997_s0] sm:$0xff] (!%p163_p10)  ;;  %vm232_vm0 = vcmask (!%p163_p10), 293888   ;;  %vm281_vm1 = vcmask (!%p163_p10), 1043456   ;;  %v212_v9 = vld [vmem:[%s997_s0 + $0x8] sm:$0xff] (!%p163_p10)  ;;  %v213_v11 = vld [vmem:[%s997_s0 + $0x10] sm:$0xff] (!%p163_p10) }
   0xf   : > { %166 = sbr.rel (%p163_p10) target bundleno = 409 (0x199), region = 28  ;;  %v219_v1 = vld [vmem:[%s997_s0 + $0x40] sm:$0xff] (!%p163_p10)  ;;  %612 = vmatprep.mubr.msk.f32.mxu0 (!%p163_p10), %vm232_vm0, %v211_v0  ;;  %v220_v10 = vld [vmem:[%s997_s0 + $0x48] sm:$0xff] (!%p163_p10)  ;;  %v221_v12 = vld [vmem:[%s997_s0 + $0x50] sm:$0xff] (!%p163_p10)  ;;  %vm209_vm2 = vcmask (!%p163_p10), 15360   ;;  %v787_v23 = vmov (!%p163_p10), 0.0  }
  0x10   : > { %624 = vmatprep.mubr.msk.f32.mxu1 (!%p163_p10), %vm232_vm0, %v219_v1  ;;  %v214_v13 = vld [vmem:[%s997_s0 + $0x18] sm:$0xff] (!%p163_p10)  ;;  %v215_v15 = vld [vmem:[%s997_s0 + $0x20] sm:$0xff] (!%p163_p10)  ;;  %v216_v17 = vld [vmem:[%s997_s0 + $0x28] sm:$0xff] (!%p163_p10)  ;;  %s184_s8 = sand.u32 (!%p163_p10), 1, %s769_s13   ;;  %vm415_vm3 = vcmask (!%p163_p10), 523264   ;;  %s578_s10 = sshll.u32 (!%p163_p10), %s777_s15, 7 }
  0x11   : > { %v222_v14 = vld [vmem:[%s997_s0 + $0x58] sm:$0xff] (!%p163_p10)  ;;  %v223_v16 = vld [vmem:[%s997_s0 + $0x60] sm:$0xff] (!%p163_p10)  ;;  %v224_v18 = vld [vmem:[%s997_s0 + $0x68] sm:$0xff] (!%p163_p10)  ;;  %s557_s9 = sshll.u32 (!%p163_p10), %s184_s8, 3  ;;  %s950_s21 = scalar_lea.hbm (!%p163_p10), %s999_s2, %s578_s10 }
  0x12   : > { %v217_v19 = vld [vmem:[%s997_s0 + $0x30] sm:$0xff] (!%p163_p10)  ;;  %v218_v21 = vld [vmem:[%s997_s0 + $0x38] sm:$0xff] (!%p163_p10)  ;;  %s433_s23 = scalar_lea.sflag (!%p163_p10), [#allocation3], %s184_s8  ;;  %s788_s27 = smov (!%p163_p10), [#allocation2]  }
  0x13   : > { %v225_v20 = vld [vmem:[%s997_s0 + $0x70] sm:$0xff] (!%p163_p10)  ;;  %v226_v22 = vld [vmem:[%s997_s0 + $0x78] sm:$0xff] (!%p163_p10)  ;;  %s711_s28 = sshll.u32 (!%p163_p10), %s788_s27, 4  ;;  %s712_s28 = int_to_ptr.vmem [resolvable:$false] %s711_s28 }
  0x14   : > { %s713_s29 = scalar_lea.vmem (!%p163_p10), %s712_s28, 256 }
  0x16   : > { %s874_s30 = scalar_select %p193_p11, %s777_s15, 1 }
  0x18   : > { %s650_s4 = smul.u32 40, %s874_s30 }
  0x1a   : > { %s200_s7 = scalar_lea.vmem %s998_s1, %s650_s4  ;;  %s559_s4 = sshll.u32 %s874_s30, 3 }
  0x1b   : > { %v227_v2 = vld [vmem:[%s200_s7] sm:$0xff]  ;;  %v228_v3 = vld [vmem:[%s200_s7 + $0x8] sm:$0xff]  ;;  %v229_v4 = vld [vmem:[%s200_s7 + $0x10] sm:$0xff]  ;;  %s186_s30 = scalar_lea.vmem [#allocation2], %s557_s9 }
  0x1c   : > { %v636_v5 = vpack.c.bf16 %v228_v3, %v227_v2  ;;  %v230_v6 = vld [vmem:[%s200_s7 + $0x18] sm:$0xff]  ;;  %v231_v8 = vld [vmem:[%s200_s7 + $0x20] sm:$0xf]  ;;  %s940_s7 = scalar_lea.vmem %s1000_s3, %s559_s4  ;;  %s451_s11 = sshll.u32 %s186_s30, 4  ;;  %s452_s11 = int_to_ptr.vmem [resolvable:$true] %s451_s11 }
  0x1d   : > { %v640_v7 = vpack.c.bf16 %v230_v6, %v229_v4  ;;  %210 = vst.msk [vmem:[%s940_s7] sm:$0xff] %vm209_vm2, %v787_v23  ;;  %s707_s26 = scalar_lea.vmem %s452_s11, 128  ;;  %p714_p1 = scmp.lt.s32.totalorder %s452_s11, %s712_s28 }
  0x1e   : > { %637 = vmatprep.subr.bf16.mxu0 %v636_v5  ;;  %644 = vmatprep.subr.bf16.mxu1 %v636_v5  ;;  %p708_p12 = scmp.ne.s32.totalorder %s452_s11, %s707_s26  ;;  %p715_p2 = scmp.lt.s32.totalorder %s713_s29, %s707_s26 }
  0x1f   : > { %639 = vmatpush3.bf16.msra.mxu0 %v636_v5  ;;  %647 = vmatpush3.bf16.msra.mxu1 %v636_v5 }
  0x20   : > { %641 = vmatprep.subr.bf16.mxu0 %v640_v7  ;;  %645 = vmatprep.subr.bf16.mxu1 %v640_v7  ;;  %p709_p13 = pnand %p708_p12, %p849_p4  ;;  %p716_p3 = por %p715_p2, %p714_p1 }
  0x22   : > { %p710_p0 = pneg %p709_p13 }
  0x23   : > { %643 = vmatpush3.bf16.msra.mxu0 %v640_v7  ;;  %648 = vmatpush3.bf16.msra.mxu1 %v640_v7 }
  0x24   : > { %610 = vmatprep.subr.msk.mxu0 %vm281_vm1, %v231_v8  ;;  %646 = vmatprep.subr.msk.mxu1 %vm281_vm1, %v231_v8  ;;  %p717_p5 = pnand %p716_p3, %p710_p0 }
  0x27   : > { %611 = vmatpush3.msk.msra.mxu0 %vm281_vm1, %v231_v8  ;;  %649 = vmatpush3.msk.msra.mxu1 %vm281_vm1, %v231_v8 }
  0x28   : > { %613 = vmatmul.mubr.msk.f32.vlgmr.msra.gmra.mrb[0].mxu0 %vm232_vm0, %v212_v9  ;;  %625 = vmatmul.mubr.msk.f32.vlgmr.msra.gmra.mrb[0].mxu1 %vm232_vm0, %v220_v10 }
  0x29   : > { %615 = vmatprep.mubr.msk.f32.mxu0 %vm232_vm0, %v213_v11  ;;  %627 = vmatprep.mubr.msk.f32.mxu1 %vm232_vm0, %v221_v12 }
  0x2c   : > { %616 = vmatmul.mubr.msk.f32.gmra.mrb[2].mxu0 %vm232_vm0, %v214_v13  ;;  %628 = vmatmul.mubr.msk.f32.gmra.mrb[2].mxu1 %vm232_vm0, %v222_v14 }
  0x2d   : > { %618 = vmatprep.mubr.msk.f32.mxu0 %vm232_vm0, %v215_v15  ;;  %630 = vmatprep.mubr.msk.f32.mxu1 %vm232_vm0, %v223_v16 }
  0x30   : > { %619 = vmatmul.mubr.msk.f32.gmra.mrb[4].mxu0 %vm232_vm0, %v216_v17  ;;  %631 = vmatmul.mubr.msk.f32.gmra.mrb[4].mxu1 %vm232_vm0, %v224_v18 }
  0x31   : > { %621 = vmatprep.mubr.msk.f32.mxu0 %vm232_vm0, %v217_v19  ;;  %633 = vmatprep.mubr.msk.f32.mxu1 %vm232_vm0, %v225_v20 }
  0x34   : > { %622 = vmatmul.mubr.msk.f32.gmra.mrb[6].mxu0 %vm232_vm0, %v218_v21  ;;  %634 = vmatmul.mubr.msk.f32.gmra.mrb[6].mxu1 %vm232_vm0, %v226_v22 }
  0xfb   : > { %v614_v24 = vpop.f32.mrb[0].mxu0  ;;  %v626_v25 = vpop.f32.mrb[0].mxu1 }
  0xfc   : > { %v351_v26 = vpop.f32.mrb[1].mxu0  ;;  %v384_v27 = vpop.f32.mrb[1].mxu1 }
  0xfd   : > { %v418_v28 = vsel %vm415_vm3, %v351_v26, 0.0  ;;  %v425_v29 = vmul.f32 %v351_v26, %v351_v26  ;;  %416 = vst.msk [vmem:[%s186_s30] sm:$0xff] %vm415_vm3, %v351_v26 }
  0xfe   : > { %419 = vadd.xlane.f32.xlu0 %v418_v28 }
  0xff   : > { %v617_v30 = vpop.f32.mrb[2].mxu0  ;;  %v629_v31 = vpop.f32.mrb[2].mxu1  ;;  %v426_v34 = vsel %vm415_vm3, %v425_v29, 0.0 }
 0x100   : > { %v392_v32 = vpop.f32.mrb[3].mxu1  ;;  %v360_v33 = vpop.f32.mrb[3].mxu0 }
 0x102   : > { %427 = vadd.xlane.f32.xlu0 %v426_v34 }
 0x103   : > { %v620_v35 = vpop.f32.mrb[4].mxu0  ;;  %v632_v36 = vpop.f32.mrb[4].mxu1 }
 0x104   : > { %v368_v37 = vpop.f32.mrb[5].mxu0  ;;  %v400_v38 = vpop.f32.mrb[5].mxu1 }
 0x107   : > { %v623_v39 = vpop.f32.mrb[6].mxu0  ;;  %v635_v40 = vpop.f32.mrb[6].mxu1 }
 0x108   : > { %v376_v41 = vpop.f32.mrb[7].mxu0  ;;  %v408_v42 = vpop.f32.mrb[7].mxu1 }
 0x109   : > { %720 = shalt.err (!%p717_p5)
}
 0x10a   : > { %s721_s15 = scalar_lea.hbm %s950_s21, 128  ;;  %s725_s6 = scalar_lea.hbm %s999_s2, 256 }
 0x10b   : > { %p722_p6 = scmp.ne.s32.totalorder %s950_s21, %s721_s15  ;;  %p726_p10 = scmp.lt.u32.totalorder %s950_s21, %s999_s2 }
 0x10c   : > { %p727_p11 = scmp.lt.u32.totalorder %s725_s6, %s721_s15  ;;  %p729_p13 = scmp.lt.u32.totalorder %s721_s15, %s950_s21 }
 0x10d   : > { %p723_p7 = pnand %p722_p6, %p849_p4 }
 0x10e   : > { %p728_p12 = por %p727_p11, %p726_p10 }
 0x10f   : > { %p724_p9 = pneg %p723_p7 }
 0x110   : > { %p730_p0 = por %p729_p13, %p728_p12 }
 0x112   : > { %p731_p1 = pnand %p730_p0, %p724_p9 }
 0x114   : > { %734 = shalt.err (!%p731_p1)
}
 0x115   : > { %651 = dma.vmem_to_hbm [thread:$0]  (%p849_p4), %s452_s11, 128, %s950_s21, %s433_s23   ;;  %v417_v43 = vld [vmem:[%s940_s7] sm:$0xff]  ;;  %vm422_vm4 = vcmask 7168   ;;  %vm430_vm5 = vcmask 15368  }
 0x18b   : > { %v420_v44 = vpop.xlane.xlu0 %419 }
 0x18c   : > { %v421_v45 = vadd.f32 %v420_v44, %v417_v43 }
 0x18e   : > { %423 = vst.msk [vmem:[%s940_s7] sm:$0xff] %vm422_vm4, %v421_v45 }
 0x18f   : > { %v428_v47 = vpop.xlane.xlu0 %427 }
 0x195   : > { %v424_v46 = vld [vmem:[%s940_s7] sm:$0xff] }
 0x196   : > { %v429_v48 = vadd.f32 %v428_v47, %v424_v46 }
 0x198   : > { %431 = vst.msk [vmem:[%s940_s7] sm:$0xff] %vm430_vm5, %v429_v48 }
 0x199 PF: > { %p657_p2 = scmp.ge.s32.totalorder %s785_s17, 2  ;;  %s466_s22 = sand.u32 1, %s765_s12  }
 0x19a   : > { %s467_s30 = scalar_lea.sflag [#allocation3], %s466_s22 }
 0x19b   : > { %p654_p3 = pnand %p657_p2, %p856_p8 }
 0x19d   : > { %760 = dma.done.wait (!%p654_p3), %s467_s30, 128  }
 0x19e   : > { %762 = vsyncadd (!%p654_p3), %s467_s30, 4294967168  ;;  %s17_s17 = sadd.s32 1, %s785_s17   ;;  %s1003_s12 = smov %s769_s13 }
 0x19f   : > { %p14_p4 = scmp.ge.s32.totalorder %s17_s17, 4   ;;  %s1004_s13 = smov %s773_s14 }
 0x1a0   : > { %s1005_s14 = smov %s862_s25  ;;  %s1006_s15 = smov %s781_s16 }
 0x1a1   : > { %s1007_s16 = smov %s1009_s20  ;;  %16 = sbr.rel (!%p14_p4) target bundleno = 4 (0x4), region = 79 }
 0x1a8   :  { %479 = vsyncpa [#allocation3], 1 }
 0x1a9   :  { %481 = vsyncpa [#allocation3 + $0x1], 1 }

</bundles_post_ra>
